<compile_context>
chip_gen: v6e
topology: v6e:2x2x1
jax: 0.10.0
libtpu: 0.0.40
codegen_flags: <defaults>
</compile_context>

<pallas_src>
import jax
import jax.numpy as jnp
from jax.experimental import pallas as pl
from jax.experimental.pallas import tpu as pltpu

LANES = 128
MAX_ROW_TILE = 512  # 512 * 128 = 65536 lanes per grid step


def _fused_affine_kernel(coef_ref, x_ref, o_ref):
    # coef_ref: SMEM (3,) f32 -> [c0, c1, b_eff]
    # x_ref:    VMEM (2, row_tile, 128) -> x_ref[f] is a dense per-feature slab
    # o_ref:    VMEM (row_tile, 128)    -> dense, unmasked stores
    c0 = coef_ref[0]
    c1 = coef_ref[1]
    b = coef_ref[2]
    # Pure VPU on full (8,128)-dense vregs: two scalar*vector FMAs + bias add.
    o_ref[...] = c0 * x_ref[0] + c1 * x_ref[1] + b


def _round_up(n, m):
    return ((n + m - 1) // m) * m


def circle_model_v0_forward(x, w1, b1, w2, b2):
    """x: (B, 2) f32. w1: (5, 2), b1: (5,), w2: (1, 5), b2: (1,) (PyTorch shapes)."""
    B = x.shape[0]

    # --- exact algebraic fusion of layer_1 and layer_2 (no activation between) ---
    # out = x @ w1.T @ w2.T + (b1 @ w2.T + b2) = x @ (w2 @ w1).T + (w2 @ b1 + b2)
    w_eff = (w2 @ w1).reshape(2).astype(jnp.float32)        # (2,)  -> [c0, c1]
    b_eff = (w2 @ b1 + b2).reshape(1).astype(jnp.float32)   # (1,)
    coeffs = jnp.concatenate([w_eff, b_eff])                 # (3,) f32 -> SMEM

    # --- tile sizing: batch -> 128-lane rows, row blocks of up to 512 sublanes ---
    rows = -(-B // LANES)                       # ceil(B / 128)
    if rows <= 16:
        # tiny batch: one sublane-aligned tile; splitting would only add overhead
        row_tile = _round_up(max(rows, 1), 8)
    else:
        # >= 2 grid steps (keeps both v7x TensorCores busy), each a multiple of
        # 8 sublanes, capped at 64K lanes to bound VMEM / keep overhead ~0
        half = -(-rows // 2)
        row_tile = min(MAX_ROW_TILE, _round_up(half, 8))
    rows_p = _round_up(rows, row_tile)
    bp = rows_p * LANES
    num_tiles = rows_p // row_tile

    # --- sublane-dense relayout: (B,2) -> (2, rows_p, 128) feature-major slabs ---
    # Single pad + reshape (fused into one copy by XLA); padded lanes are junk
    # but are sliced away below (they produce b_eff, never consumed).
    x_t = jnp.pad(x.T.astype(jnp.float32), ((0, 0), (0, bp - B))).reshape(2, rows_p, LANES)

    out_t = pl.pallas_call(
        _fused_affine_kernel,
        out_shape=jax.ShapeDtypeStruct((rows_p, LANES), jnp.float32),
        grid=(num_tiles,),
        in_specs=[
            # tiny fused coefficients -> SMEM, untiled (free scalar-path reads)
            pl.BlockSpec(memory_space=pltpu.MemorySpace.SMEM),
            # both feature slabs, row_tile x 128 dense batch block
            pl.BlockSpec((2, row_tile, LANES), lambda i: (0, i, 0)),
        ],
        out_specs=pl.BlockSpec((row_tile, LANES), lambda i: (i, 0)),
        compiler_params=pltpu.CompilerParams(
            dimension_semantics=("parallel",),  # megacore-shardable, double-buffered
        ),
    )(coeffs, x_t)

    # back to the PyTorch (B, 1) convention
    return out_t.reshape(bp)[:B].reshape(B, 1)


def init_params(key):
    """Deterministic init matching PyTorch nn.Linear shapes (uniform +/- 1/sqrt(fan_in))."""
    ks = jax.random.split(key, 8)

    def linear_init(kw, kb, in_f, out_f):
        bound = 1.0 / jnp.sqrt(in_f)
        w = jax.random.uniform(kw, (out_f, in_f), jnp.float32, -bound, bound)
        b = jax.random.uniform(kb, (out_f,), jnp.float32, -bound, bound)
        return w, b

    w1, b1 = linear_init(ks[0], ks[1], 2, 5)   # layer_1
    w2, b2 = linear_init(ks[2], ks[3], 5, 1)   # layer_2
    # two_linear_layers (dead code in forward, created only for parity)
    _wa, _ba = linear_init(ks[4], ks[5], 2, 5)
    _wb, _bb = linear_init(ks[6], ks[7], 5, 1)
    return (w1, b1, w2, b2), (_wa, _ba, _wb, _bb)


if __name__ == "__main__":
    key = jax.random.PRNGKey(0)
    k_x1, k_x2, k_p = jax.random.split(key, 3)

    (w1, b1, w2, b2), _unused = init_params(k_p)

    # Small batch: exercises the single-tile path (rows=2 -> one 8x128 tile).
    B1 = 200
    x1 = jax.random.normal(k_x1, (B1, 2), dtype=jnp.float32)
    out1 = jax.block_until_ready(circle_model_v0_forward(x1, w1, b1, w2, b2))
    ref1 = (x1 @ w1.T + b1) @ w2.T + b2
    assert out1.shape == (B1, 1)
    assert jnp.allclose(out1, ref1, atol=1e-5, rtol=1e-5), "mismatch vs reference (B=200)"

    # Larger batch: exercises the multi-tile "parallel" grid path (grid=(2,)).
    B2 = 5000
    x2 = jax.random.normal(k_x2, (B2, 2), dtype=jnp.float32)
    out2 = jax.block_until_ready(circle_model_v0_forward(x2, w1, b1, w2, b2))
    ref2 = (x2 @ w1.T + b1) @ w2.T + b2
    assert out2.shape == (B2, 1)
    assert jnp.allclose(out2, ref2, atol=1e-5, rtol=1e-5), "mismatch vs reference (B=5000)"

    print("KERNEL_OK")
</pallas_src>

<mosaic_0001>
module attributes {stable_mosaic.version = 11 : i64} {
  func.func @_fused_affine_kernel(%arg0: i32, %arg1: memref<3xf32, #tpu.memory_space<smem>>, %arg2: memref<2x8x128xf32, #tpu.memory_space<vmem>>, %arg3: memref<8x128xf32, #tpu.memory_space<vmem>>) attributes {dimension_semantics = [#tpu.dimension_semantics<parallel>], iteration_bounds = array<i64: 1>, scalar_prefetch = 0 : i64, scratch_operands = 0 : i64, tpu.core_type = #tpu.core_type<tc>, window_params = [{transform_indices = @transform_0, window_bounds = array<i64: 3>}, {transform_indices = @transform_1, window_bounds = array<i64: 2, 8, 128>}, {transform_indices = @transform_2, window_bounds = array<i64: 8, 128>}]} {
    %c0 = arith.constant 0 : index
    %0 = memref.load %arg1[%c0] : memref<3xf32, #tpu.memory_space<smem>>
    %c1 = arith.constant 1 : index
    %1 = memref.load %arg1[%c1] : memref<3xf32, #tpu.memory_space<smem>>
    %c2 = arith.constant 2 : index
    %2 = memref.load %arg1[%c2] : memref<3xf32, #tpu.memory_space<smem>>
    %c0_0 = arith.constant 0 : index
    %c0_1 = arith.constant 0 : index
    %c0_2 = arith.constant 0 : index
    %3 = vector.load %arg2[%c0_0, %c0_1, %c0_2] : memref<2x8x128xf32, #tpu.memory_space<vmem>>, vector<1x8x128xf32>
    %4 = vector.shape_cast %3 : vector<1x8x128xf32> to vector<8x128xf32>
    %5 = vector.broadcast %0 : f32 to vector<8x128xf32>
    %6 = arith.mulf %5, %4 : vector<8x128xf32>
    %c1_3 = arith.constant 1 : index
    %c0_4 = arith.constant 0 : index
    %c0_5 = arith.constant 0 : index
    %7 = vector.load %arg2[%c1_3, %c0_4, %c0_5] : memref<2x8x128xf32, #tpu.memory_space<vmem>>, vector<1x8x128xf32>
    %8 = vector.shape_cast %7 : vector<1x8x128xf32> to vector<8x128xf32>
    %9 = vector.broadcast %1 : f32 to vector<8x128xf32>
    %10 = arith.mulf %9, %8 : vector<8x128xf32>
    %11 = arith.addf %6, %10 : vector<8x128xf32>
    %12 = vector.broadcast %2 : f32 to vector<8x128xf32>
    %13 = arith.addf %11, %12 : vector<8x128xf32>
    %c0_6 = arith.constant 0 : index
    %c0_7 = arith.constant 0 : index
    %14 = vector.load %arg3[%c0_6, %c0_7] : memref<8x128xf32, #tpu.memory_space<vmem>>, vector<8x128xf32>
    tpu.vector_store %arg3[%c0_6, %c0_7], %13 {strides = array<i32>} : memref<8x128xf32, #tpu.memory_space<vmem>>, vector<8x128xf32>,
    return
  }
  func.func @transform_0(%arg0: i32) -> i32 {
    %c0_i32 = arith.constant 0 : i32
    %c0_i32_0 = arith.constant 0 : i32
    return %c0_i32 : i32
  }
  func.func @transform_1(%arg0: i32) -> (i32, i32, i32) {
    %c0_i32 = arith.constant 0 : i32
    %c0_i32_0 = arith.constant 0 : i32
    %c0_i32_1 = arith.constant 0 : i32
    return %c0_i32, %arg0, %c0_i32_0 : i32, i32, i32
  }
  func.func @transform_2(%arg0: i32) -> (i32, i32) {
    %c0_i32 = arith.constant 0 : i32
    %c0_i32_0 = arith.constant 0 : i32
    return %arg0, %c0_i32 : i32, i32
  }
}

</mosaic_0001>

<bundles_post_ra>
// kernel: tpu_custom_call.1
= control target key start
LH: loop header
LB: loop body
LE: loop exit
PB: predicated region body
PF: predicated region fallthrough
CT: control target
= control target key end

     0   :  { %7 = vsyncpa [#allocation5], 0  ;;  %s157_s0 = inlined_call_operand.hbm [shape: f32[3], index: 0, kind: input, shape index: {}]   ;;  %s158_s1 = inlined_call_operand.hbm [shape: f32[2,8,128], index: 1, kind: input, shape index: {}]   ;;  %s159_s2 = inlined_call_operand.hbm [shape: f32[8,128], index: 2, kind: output, shape index: {}]  }
   0x1   :  { %8 = vsyncpa [#allocation3], 0 }
   0x2   :  { %9 = vsyncpa [#allocation4], 0  ;;  %s128_s9 = smov [#allocation2]   ;;  %s129_s12 = smov [#allocation6]  }
   0x3   :  { %17 = dma.hbm_to_smem %s157_s0, 16, %s128_s9, [#allocation5]  }
   0x4   :  { %s23_s13 = sshll.u32 %s129_s12, 4  ;;  %s24_s13 = int_to_ptr.vmem [resolvable:$true] %s23_s13 }
   0x5   :  { %s90_s14 = scalar_lea.vmem %s24_s13, 256  ;;  %p95_p1 = scmp.lt.s32.totalorder %s24_s13, %s24_s13 }
   0x6   :  { %p91_p0 = scmp.ne.s32.totalorder %s24_s13, %s90_s14  ;;  %p96_p2 = scmp.lt.s32.totalorder %s90_s14, %s90_s14 }
   0x8   :  { %p97_p3 = por %p96_p2, %p95_p1 }
   0xa   :  { %p98_p4 = pnand %p97_p3, %p91_p0 }
   0xc   :  { %101 = shalt.err (!%p98_p4)
}
   0xd   :  { %s130_s15 = smov 128   ;;  %s131_s16 = smov 8  }
   0xe   :  { %29 = dma.hbm_to_vmem [thread:$0]  %s158_s1, 256, %s24_s13, [#allocation3], %s130_s15, %s130_s15, %s131_s16  }
   0xf   :  { %122 = dma.done.wait [#allocation5], 16  }
  0x10   :  { %123 = vsyncadd [#allocation5], 4294967280 }
  0x11   :  { %124 = dma.done.wait [#allocation3], 256  }
  0x12   :  { %125 = vsyncadd [#allocation3], 4294967040 }
  0x13   :  { %36 = sfence }
  0x14   :  { %s37_s0 = sld [smem:[#allocation2]]  ;;  %v40_v0 = vld [vmem:[#allocation6] sm:$0xff]  ;;  %v44_v1 = vld [vmem:[#allocation6 + $0x8] sm:$0xff]  ;;  %s132_s21 = smov [#allocation7]  }
  0x15   :  { %s67_s19 = sld [smem:[#allocation2 + $0x1]]  ;;  %s57_s22 = sshll.u32 %s132_s21, 4  ;;  %s58_s22 = int_to_ptr.vmem [resolvable:$true] %s57_s22 }
  0x16   :  { %s68_s20 = sld [smem:[#allocation2 + $0x2]]  ;;  %s102_s1 = scalar_lea.vmem %s58_s22, 128 }
  0x17   :  { %p103_p5 = scmp.ne.s32.totalorder %s58_s22, %s102_s1  ;;  %p107_p6 = scmp.lt.s32.totalorder %s58_s22, %s58_s22 }
  0x18   :  { %p108_p7 = scmp.lt.s32.totalorder %s102_s1, %s102_s1 }
  0x1a   :  { %v41_v2 = vstv %s37_s0  ;;  %p109_p8 = por %p108_p7, %p107_p6 }
  0x1b   :  { %v42_v3 = vmul.f32 %v41_v2, %v40_v0  ;;  %v45_v4 = vstv %s67_s19 }
  0x1c   :  { %v46_v5 = vmul.f32 %v45_v4, %v44_v1  ;;  %v48_v6 = vstv %s68_s20  ;;  %p110_p9 = pnand %p109_p8, %p103_p5 }
  0x1e   :  { %v47_v7 = vadd.f32 %v46_v5, %v42_v3 }
  0x20   :  { %v49_v8 = vadd.f32 %v48_v6, %v47_v7 }
  0x22   :  { %50 = vst [vmem:[#allocation7] sm:$0xff] %v49_v8 }
  0x23   :  { %113 = shalt.err (!%p110_p9)
}
  0x24   :  { %60 = dma.vmem_to_hbm [thread:$0]  %s58_s22, 128, %s159_s2, [#allocation4]  }
  0x25   :  { %126 = dma.done.wait [#allocation4], 128  }
  0x26   :  { %127 = vsyncadd [#allocation4], 4294967168 }
  0x27   :  { %64 = vsyncpa [#allocation3], 1 }
  0x28   :  { %65 = vsyncpa [#allocation4], 1 }
  0x29   :  { %66 = vsyncpa [#allocation5], 1 }

</bundles_post_ra>
